<compile_context>
chip_gen: v6e
topology: v6e:2x2x1
jax: 0.10.0
libtpu: 0.0.40
codegen_flags: <defaults>
</compile_context>

<pallas_src>
import functools

import jax
import jax.numpy as jnp
from jax.experimental import pallas as pl
from jax.experimental.pallas import tpu as pltpu

_LN_EPS = 1e-5


def _round_up(x, m):
    return ((x + m - 1) // m) * m


def _slab_layout(input_dims, n_actions, h1, h2):
    """Static row/column offsets of every parameter inside the packed slab.

    Row block [0, h2)       : W2^T in lanes [0, h1) + every h2-length column
                              (b2, g2, be2, ba, wq, Wa^T, bq-scalar).
    Row block [h2, h2 + h1) : W1^T in lanes [0, input_dims) + b1, g1, be1.
    """
    c2 = {
        "b2": h1, "g2": h1 + 1, "be2": h1 + 2,
        "ba": h1 + 3, "wq": h1 + 4,
        "wat": h1 + 5,
        "bq": h1 + 5 + n_actions,
    }
    c1 = {"b1": input_dims, "g1": input_dims + 1, "be1": input_dims + 2}
    lanes = max(c2["bq"] + 1, c1["be1"] + 1)
    rows = _round_up(h1 + h2, 8)          # sublane-aligned row count
    cols = _round_up(max(lanes, 128), 128)  # lane-aligned width -> one clean DMA
    return rows, cols, c2, c1


def _layernorm_featmajor(x, gamma_col, beta_col, d):
    """LayerNorm over the feature (sublane) axis of a (d, TB) tile.

    Matches torch.nn.LayerNorm: biased variance, eps=1e-5.  Uses sum * (1/d)
    and rsqrt (EUP slot) instead of divisions.
    """
    inv_d = 1.0 / float(d)
    mu = jnp.sum(x, axis=0, keepdims=True) * inv_d
    xc = x - mu
    var = jnp.sum(xc * xc, axis=0, keepdims=True) * inv_d
    return xc * jax.lax.rsqrt(var + _LN_EPS) * gamma_col + beta_col


def critic_kernel(x_ref, p_ref, out_ref, *, input_dims, n_actions, h1, h2):
    # x_ref : (input_dims + n_actions, TB) f32   -- batch on the lane axis
    # p_ref : (R, C) packed parameter slab (grid-invariant)
    # out_ref: (1, TB) f32                       -- lane-dense q row
    _, _, c2, c1 = _slab_layout(input_dims, n_actions, h1, h2)
    r1 = h2                                   # row offset of the fc1 block

    x = x_ref[...]                            # (in+act, TB)

    # --- fc1 on the VPU (contraction depth = input_dims, too shallow for MXU)
    h = p_ref[r1:r1 + h1, c1["b1"]:c1["b1"] + 1]            # (h1, 1) bias col
    for k in range(input_dims):                             # tiny, unrolled
        h = h + p_ref[r1:r1 + h1, k:k + 1] * x[k:k + 1, :]
    h = _layernorm_featmajor(h,
                             p_ref[r1:r1 + h1, c1["g1"]:c1["g1"] + 1],
                             p_ref[r1:r1 + h1, c1["be1"]:c1["be1"] + 1], h1)
    h = jnp.maximum(h, 0.0)

    # --- fc2 on the MXU: (h2, TB) = W2^T @ h  (N = TB, full 128-lane width)
    h = jnp.dot(p_ref[0:h2, 0:h1], h,
                preferred_element_type=jnp.float32) \
        + p_ref[0:h2, c2["b2"]:c2["b2"] + 1]
    h = _layernorm_featmajor(h,
                             p_ref[0:h2, c2["g2"]:c2["g2"] + 1],
                             p_ref[0:h2, c2["be2"]:c2["be2"] + 1], h2)
    # NOTE: no relu after the second LayerNorm (matches the PyTorch reference).

    # --- action branch on the VPU (contraction depth = n_actions)
    av = p_ref[0:h2, c2["ba"]:c2["ba"] + 1]
    for k in range(n_actions):
        av = av + p_ref[0:h2, c2["wat"] + k:c2["wat"] + k + 1] \
                 * x[input_dims + k:input_dims + k + 1, :]
    av = jnp.maximum(av, 0.0)

    sav = jnp.maximum(h + av, 0.0)

    # --- q head: VPU multiply + cross-sublane (XLU) reduce -> (1, TB) row
    q = jnp.sum(sav * p_ref[0:h2, c2["wq"]:c2["wq"] + 1],
                axis=0, keepdims=True) \
        + p_ref[0:1, c2["bq"]:c2["bq"] + 1]
    out_ref[...] = q.astype(out_ref.dtype)


def pack_params(params, input_dims, n_actions, h1, h2):
    """Pack all parameters into one tile-aligned (R, 128k) f32 slab.

    Call ONCE per parameter update (hoisted out of the per-step forward path).
    """
    rows, cols, c2, c1 = _slab_layout(input_dims, n_actions, h1, h2)
    f32 = lambda a: jnp.asarray(a, jnp.float32)
    slab = jnp.zeros((rows, cols), jnp.float32)
    # layer-2 rows [0, h2)
    slab = slab.at[0:h2, 0:h1].set(f32(params["w2"]).T)                    # W2^T
    slab = slab.at[0:h2, c2["b2"]].set(f32(params["b2"]).reshape(h2))
    slab = slab.at[0:h2, c2["g2"]].set(f32(params["g2"]).reshape(h2))
    slab = slab.at[0:h2, c2["be2"]].set(f32(params["be2"]).reshape(h2))
    slab = slab.at[0:h2, c2["ba"]].set(f32(params["ba"]).reshape(h2))
    slab = slab.at[0:h2, c2["wq"]].set(f32(params["wq"]).reshape(h2))
    slab = slab.at[0:h2, c2["wat"]:c2["wat"] + n_actions].set(f32(params["wa"]).T)
    slab = slab.at[0, c2["bq"]].set(f32(params["bq"]).reshape(()))
    # layer-1 rows [h2, h2 + h1)
    slab = slab.at[h2:h2 + h1, 0:input_dims].set(f32(params["w1"]).T)      # W1^T
    slab = slab.at[h2:h2 + h1, c1["b1"]].set(f32(params["b1"]).reshape(h1))
    slab = slab.at[h2:h2 + h1, c1["g1"]].set(f32(params["g1"]).reshape(h1))
    slab = slab.at[h2:h2 + h1, c1["be1"]].set(f32(params["be1"]).reshape(h1))
    return slab


def _choose_block_b(B):
    """Lane-aligned batch tile: one 128-wide step for tiny B; otherwise at
    least two grid steps (so v7x megacore splits the batch across its two
    TensorCores), capped at 2048 lanes/step (VMEM per step stays < ~1 MiB on
    every generation, far under even v7x's 64 MiB)."""
    b128 = _round_up(max(B, 1), 128)
    if b128 <= 128:
        return 128
    return min(2048, _round_up(pl.cdiv(b128, 2), 128))


def critic_forward(state, action, packed, *, input_dims, n_actions, h1, h2,
                   block_b=None):
    state = jnp.asarray(state, jnp.float32)
    action = jnp.asarray(action, jnp.float32)
    B = state.shape[0]
    assert state.shape[1] == input_dims and action.shape == (B, n_actions)

    if block_b is None:
        block_b = _choose_block_b(B)
    assert block_b % 128 == 0 and block_b >= 128
    b_pad = _round_up(B, block_b)

    # One merged, transposed (feature-major / batch-in-lanes) input: a single
    # input DMA per grid step instead of two tiny ones.
    x = jnp.concatenate([state, action], axis=1)          # (B, in+act)
    if b_pad != B:
        x = jnp.pad(x, ((0, b_pad - B), (0, 0)))
    x_t = x.T                                             # (in+act, b_pad)

    kernel = functools.partial(critic_kernel, input_dims=input_dims,
                               n_actions=n_actions, h1=h1, h2=h2)

    flops = 2 * b_pad * (input_dims * h1 + h1 * h2 + n_actions * h2 + h2)
    bytes_accessed = 4 * (b_pad * (input_dims + n_actions + 1) + packed.size)

    out = pl.pallas_call(
        kernel,
        out_shape=jax.ShapeDtypeStruct((1, b_pad), jnp.float32),
        grid_spec=pltpu.PrefetchScalarGridSpec(
            num_scalar_prefetch=0,
            grid=(b_pad // block_b,),
            in_specs=[
                pl.BlockSpec((input_dims + n_actions, block_b), lambda i: (0, i)),
                # Grid-invariant index_map: the param slab is DMA'd once and
                # stays resident in VMEM across all grid steps.
                pl.BlockSpec(packed.shape, lambda i: (0, 0)),
            ],
            out_specs=pl.BlockSpec((1, block_b), lambda i: (0, i)),
        ),
        compiler_params=pltpu.CompilerParams(
            dimension_semantics=("parallel",)),
        cost_estimate=pl.CostEstimate(flops=flops, transcendentals=2 * b_pad,
                                      bytes_accessed=bytes_accessed),
    )(x_t, packed)
    return out[0, :B][:, None]                            # (B, 1)


def init_params(key, input_dims, fc_dims, n_actions):
    """Deterministic init mirroring the PyTorch __init__ bounds.

    PyTorch Linear weight is (out, in); weight.size()[0] == out_features, so
    f1 = 1/sqrt(fc_dims[0]) and f2 = 1/sqrt(fc_dims[1]) as in the reference.
    Weights are stored as (in, out) so the math reads x @ W.
    """
    k = jax.random.split(key, 8)
    f1 = 1.0 / (fc_dims[0] ** 0.5)
    f2 = 1.0 / (fc_dims[1] ** 0.5)
    fa = 1.0 / (n_actions ** 0.5)   # PyTorch default init for action_value
    f3 = 0.003

    def u(kk, shape, bound):
        return jax.random.uniform(kk, shape, jnp.float32, -bound, bound)

    return {
        "w1": u(k[0], (input_dims, fc_dims[0]), f1),
        "b1": u(k[1], (1, fc_dims[0]), f1),
        "g1": jnp.ones((1, fc_dims[0]), jnp.float32),
        "be1": jnp.zeros((1, fc_dims[0]), jnp.float32),
        "w2": u(k[2], (fc_dims[0], fc_dims[1]), f2),
        "b2": u(k[3], (1, fc_dims[1]), f2),
        "g2": jnp.ones((1, fc_dims[1]), jnp.float32),
        "be2": jnp.zeros((1, fc_dims[1]), jnp.float32),
        "wa": u(k[4], (n_actions, fc_dims[1]), fa),
        "ba": u(k[5], (1, fc_dims[1]), fa),
        "wq": u(k[6], (fc_dims[1], 1), f3),
        "bq": u(k[7], (1, 1), f3),
    }


def reference_forward(state, action, p):
    """Pure-JAX reference for a correctness check."""
    def ln(x, g, b):
        mu = jnp.mean(x, -1, keepdims=True)
        var = jnp.mean((x - mu) ** 2, -1, keepdims=True)
        return (x - mu) * jax.lax.rsqrt(var + _LN_EPS) * g + b
    h = ln(state @ p["w1"] + p["b1"], p["g1"], p["be1"])
    h = jnp.maximum(h, 0.0)
    h = ln(h @ p["w2"] + p["b2"], p["g2"], p["be2"])
    av = jnp.maximum(action @ p["wa"] + p["ba"], 0.0)
    sav = jnp.maximum(h + av, 0.0)
    return sav @ p["wq"] + p["bq"]


if __name__ == "__main__":
    # MountainCarContinuous: state dim 2, action dim 1. Small hidden dims.
    INPUT_DIMS, N_ACTIONS = 2, 1
    FC_DIMS = (32, 32)

    key = jax.random.PRNGKey(0)
    k_params, k_s1, k_a1, k_s2, k_a2 = jax.random.split(key, 5)
    params = init_params(k_params, INPUT_DIMS, FC_DIMS, N_ACTIONS)

    # Pack once per parameter update (hoisted out of the forward path).
    packed = jax.block_until_ready(
        pack_params(params, INPUT_DIMS, N_ACTIONS, FC_DIMS[0], FC_DIMS[1]))

    fwd = functools.partial(critic_forward, input_dims=INPUT_DIMS,
                            n_actions=N_ACTIONS, h1=FC_DIMS[0], h2=FC_DIMS[1])

    # 1) Nominal DDPG batch (single grid step).
    B1 = 8
    s1 = jax.random.normal(k_s1, (B1, INPUT_DIMS), jnp.float32)
    a1 = jax.random.normal(k_a1, (B1, N_ACTIONS), jnp.float32)
    out1 = jax.block_until_ready(fwd(s1, a1, packed))
    ref1 = reference_forward(s1, a1, params)
    assert out1.shape == (B1, 1)
    assert jnp.allclose(out1, ref1, atol=2e-5, rtol=2e-5), (out1, ref1)

    # 2) Larger batch exercising batch padding + the multi-step "parallel" grid.
    B2 = 300
    s2 = jax.random.normal(k_s2, (B2, INPUT_DIMS), jnp.float32)
    a2 = jax.random.normal(k_a2, (B2, N_ACTIONS), jnp.float32)
    out2 = jax.block_until_ready(fwd(s2, a2, packed))
    ref2 = reference_forward(s2, a2, params)
    assert out2.shape == (B2, 1)
    assert jnp.allclose(out2, ref2, atol=2e-5, rtol=2e-5)

    print("KERNEL_OK")
</pallas_src>

<mosaic_0001>
module attributes {stable_mosaic.version = 11 : i64} {
  func.func @critic_kernel(%arg0: i32, %arg1: memref<3x128xf32, #tpu.memory_space<vmem>>, %arg2: memref<64x128xf32, #tpu.memory_space<vmem>>, %arg3: memref<1x128xf32, #tpu.memory_space<vmem>>) attributes {dimension_semantics = [#tpu.dimension_semantics<parallel>], iteration_bounds = array<i64: 1>, scalar_prefetch = 0 : i64, scratch_operands = 0 : i64, tpu.core_type = #tpu.core_type<tc>, window_params = [{transform_indices = @transform_0, window_bounds = array<i64: 3, 128>}, {pipeline_mode = #tpu.pipeline_mode<synchronous>, transform_indices = @transform_1, window_bounds = array<i64: 64, 128>}, {transform_indices = @transform_2, window_bounds = array<i64: 1, 128>}]} {
    %c0 = arith.constant 0 : index
    %c0_0 = arith.constant 0 : index
    %0 = vector.load %arg1[%c0, %c0_0] : memref<3x128xf32, #tpu.memory_space<vmem>>, vector<3x128xf32>
    %c32 = arith.constant 32 : index
    %c2 = arith.constant 2 : index
    %1 = vector.load %arg2[%c32, %c2] : memref<64x128xf32, #tpu.memory_space<vmem>>, vector<32x1xf32>
    %c32_1 = arith.constant 32 : index
    %c0_2 = arith.constant 0 : index
    %2 = vector.load %arg2[%c32_1, %c0_2] : memref<64x128xf32, #tpu.memory_space<vmem>>, vector<32x1xf32>
    %3 = vector.extract_strided_slice %0 {offsets = [0, 0], sizes = [1, 128], strides = [1, 1]} : vector<3x128xf32> to vector<1x128xf32>
    %4 = vector.broadcast %2 : vector<32x1xf32> to vector<32x128xf32>
    %5 = vector.broadcast %3 : vector<1x128xf32> to vector<32x128xf32>
    %6 = arith.mulf %4, %5 : vector<32x128xf32>
    %7 = vector.broadcast %1 : vector<32x1xf32> to vector<32x128xf32>
    %8 = arith.addf %7, %6 : vector<32x128xf32>
    %c32_3 = arith.constant 32 : index
    %c1 = arith.constant 1 : index
    %9 = vector.load %arg2[%c32_3, %c1] : memref<64x128xf32, #tpu.memory_space<vmem>>, vector<32x1xf32>
    %10 = vector.extract_strided_slice %0 {offsets = [1, 0], sizes = [1, 128], strides = [1, 1]} : vector<3x128xf32> to vector<1x128xf32>
    %11 = vector.broadcast %9 : vector<32x1xf32> to vector<32x128xf32>
    %12 = vector.broadcast %10 : vector<1x128xf32> to vector<32x128xf32>
    %13 = arith.mulf %11, %12 : vector<32x128xf32>
    %14 = arith.addf %8, %13 : vector<32x128xf32>
    %c32_4 = arith.constant 32 : index
    %c3 = arith.constant 3 : index
    %15 = vector.load %arg2[%c32_4, %c3] : memref<64x128xf32, #tpu.memory_space<vmem>>, vector<32x1xf32>
    %c32_5 = arith.constant 32 : index
    %c4 = arith.constant 4 : index
    %16 = vector.load %arg2[%c32_5, %c4] : memref<64x128xf32, #tpu.memory_space<vmem>>, vector<32x1xf32>
    %cst = arith.constant dense<0.000000e+00> : vector<128xf32>
    %17 = vector.multi_reduction <add>, %14, %cst [0] : vector<32x128xf32> to vector<128xf32>
    %18 = vector.shape_cast %17 : vector<128xf32> to vector<1x128xf32>
    %cst_6 = arith.constant 3.125000e-02 : f32
    %19 = vector.broadcast %cst_6 : f32 to vector<1x128xf32>
    %20 = arith.mulf %18, %19 : vector<1x128xf32>
    %21 = vector.broadcast %20 : vector<1x128xf32> to vector<32x128xf32>
    %22 = arith.subf %14, %21 : vector<32x128xf32>
    %23 = arith.mulf %22, %22 : vector<32x128xf32>
    %cst_7 = arith.constant dense<0.000000e+00> : vector<128xf32>
    %24 = vector.multi_reduction <add>, %23, %cst_7 [0] : vector<32x128xf32> to vector<128xf32>
    %25 = vector.shape_cast %24 : vector<128xf32> to vector<1x128xf32>
    %cst_8 = arith.constant 3.125000e-02 : f32
    %26 = vector.broadcast %cst_8 : f32 to vector<1x128xf32>
    %27 = arith.mulf %25, %26 : vector<1x128xf32>
    %cst_9 = arith.constant 9.99999974E-6 : f32
    %28 = vector.broadcast %cst_9 : f32 to vector<1x128xf32>
    %29 = arith.addf %27, %28 : vector<1x128xf32>
    %30 = math.rsqrt %29 : vector<1x128xf32>
    %31 = vector.broadcast %30 : vector<1x128xf32> to vector<32x128xf32>
    %32 = arith.mulf %22, %31 : vector<32x128xf32>
    %33 = vector.broadcast %15 : vector<32x1xf32> to vector<32x128xf32>
    %34 = arith.mulf %32, %33 : vector<32x128xf32>
    %35 = vector.broadcast %16 : vector<32x1xf32> to vector<32x128xf32>
    %36 = arith.addf %34, %35 : vector<32x128xf32>
    %cst_10 = arith.constant 0.000000e+00 : f32
    %37 = vector.broadcast %cst_10 : f32 to vector<32x128xf32>
    %38 = arith.maximumf %36, %37 : vector<32x128xf32>
    %c0_11 = arith.constant 0 : index
    %c0_12 = arith.constant 0 : index
    %39 = vector.load %arg2[%c0_11, %c0_12] : memref<64x128xf32, #tpu.memory_space<vmem>>, vector<32x32xf32>
    %cst_13 = arith.constant dense<0.000000e+00> : vector<32x128xf32>
    %40 = tpu.matmul %39, %38, %cst_13 {dimension_numbers = #tpu.dot_dimension_numbers<[1], [0], [0], [1], [0, 0, 1, 1], [], []>} : vector<32x32xf32>, vector<32x128xf32>, vector<32x128xf32> -> vector<32x128xf32>
    %c0_14 = arith.constant 0 : index
    %c32_15 = arith.constant 32 : index
    %41 = vector.load %arg2[%c0_14, %c32_15] : memref<64x128xf32, #tpu.memory_space<vmem>>, vector<32x1xf32>
    %42 = vector.broadcast %41 : vector<32x1xf32> to vector<32x128xf32>
    %43 = arith.addf %40, %42 : vector<32x128xf32>
    %c0_16 = arith.constant 0 : index
    %c33 = arith.constant 33 : index
    %44 = vector.load %arg2[%c0_16, %c33] : memref<64x128xf32, #tpu.memory_space<vmem>>, vector<32x1xf32>
    %c0_17 = arith.constant 0 : index
    %c34 = arith.constant 34 : index
    %45 = vector.load %arg2[%c0_17, %c34] : memref<64x128xf32, #tpu.memory_space<vmem>>, vector<32x1xf32>
    %cst_18 = arith.constant dense<0.000000e+00> : vector<128xf32>
    %46 = vector.multi_reduction <add>, %43, %cst_18 [0] : vector<32x128xf32> to vector<128xf32>
    %47 = vector.shape_cast %46 : vector<128xf32> to vector<1x128xf32>
    %cst_19 = arith.constant 3.125000e-02 : f32
    %48 = vector.broadcast %cst_19 : f32 to vector<1x128xf32>
    %49 = arith.mulf %47, %48 : vector<1x128xf32>
    %50 = vector.broadcast %49 : vector<1x128xf32> to vector<32x128xf32>
    %51 = arith.subf %43, %50 : vector<32x128xf32>
    %52 = arith.mulf %51, %51 : vector<32x128xf32>
    %cst_20 = arith.constant dense<0.000000e+00> : vector<128xf32>
    %53 = vector.multi_reduction <add>, %52, %cst_20 [0] : vector<32x128xf32> to vector<128xf32>
    %54 = vector.shape_cast %53 : vector<128xf32> to vector<1x128xf32>
    %cst_21 = arith.constant 3.125000e-02 : f32
    %55 = vector.broadcast %cst_21 : f32 to vector<1x128xf32>
    %56 = arith.mulf %54, %55 : vector<1x128xf32>
    %cst_22 = arith.constant 9.99999974E-6 : f32
    %57 = vector.broadcast %cst_22 : f32 to vector<1x128xf32>
    %58 = arith.addf %56, %57 : vector<1x128xf32>
    %59 = math.rsqrt %58 : vector<1x128xf32>
    %60 = vector.broadcast %59 : vector<1x128xf32> to vector<32x128xf32>
    %61 = arith.mulf %51, %60 : vector<32x128xf32>
    %62 = vector.broadcast %44 : vector<32x1xf32> to vector<32x128xf32>
    %63 = arith.mulf %61, %62 : vector<32x128xf32>
    %64 = vector.broadcast %45 : vector<32x1xf32> to vector<32x128xf32>
    %65 = arith.addf %63, %64 : vector<32x128xf32>
    %c0_23 = arith.constant 0 : index
    %c35 = arith.constant 35 : index
    %66 = vector.load %arg2[%c0_23, %c35] : memref<64x128xf32, #tpu.memory_space<vmem>>, vector<32x1xf32>
    %c0_24 = arith.constant 0 : index
    %c37 = arith.constant 37 : index
    %67 = vector.load %arg2[%c0_24, %c37] : memref<64x128xf32, #tpu.memory_space<vmem>>, vector<32x1xf32>
    %68 = vector.extract_strided_slice %0 {offsets = [2, 0], sizes = [1, 128], strides = [1, 1]} : vector<3x128xf32> to vector<1x128xf32>
    %69 = vector.broadcast %67 : vector<32x1xf32> to vector<32x128xf32>
    %70 = vector.broadcast %68 : vector<1x128xf32> to vector<32x128xf32>
    %71 = arith.mulf %69, %70 : vector<32x128xf32>
    %72 = vector.broadcast %66 : vector<32x1xf32> to vector<32x128xf32>
    %73 = arith.addf %72, %71 : vector<32x128xf32>
    %cst_25 = arith.constant 0.000000e+00 : f32
    %74 = vector.broadcast %cst_25 : f32 to vector<32x128xf32>
    %75 = arith.maximumf %73, %74 : vector<32x128xf32>
    %76 = arith.addf %65, %75 : vector<32x128xf32>
    %cst_26 = arith.constant 0.000000e+00 : f32
    %77 = vector.broadcast %cst_26 : f32 to vector<32x128xf32>
    %78 = arith.maximumf %76, %77 : vector<32x128xf32>
    %c0_27 = arith.constant 0 : index
    %c36 = arith.constant 36 : index
    %79 = vector.load %arg2[%c0_27, %c36] : memref<64x128xf32, #tpu.memory_space<vmem>>, vector<32x1xf32>
    %80 = vector.broadcast %79 : vector<32x1xf32> to vector<32x128xf32>
    %81 = arith.mulf %78, %80 : vector<32x128xf32>
    %cst_28 = arith.constant dense<0.000000e+00> : vector<128xf32>
    %82 = vector.multi_reduction <add>, %81, %cst_28 [0] : vector<32x128xf32> to vector<128xf32>
    %83 = vector.shape_cast %82 : vector<128xf32> to vector<1x128xf32>
    %c0_29 = arith.constant 0 : index
    %c38 = arith.constant 38 : index
    %84 = vector.load %arg2[%c0_29, %c38] : memref<64x128xf32, #tpu.memory_space<vmem>>, vector<1x1xf32>
    %85 = vector.broadcast %84 : vector<1x1xf32> to vector<1x128xf32>
    %86 = arith.addf %83, %85 : vector<1x128xf32>
    %c0_30 = arith.constant 0 : index
    %c0_31 = arith.constant 0 : index
    %87 = vector.load %arg3[%c0_30, %c0_31] : memref<1x128xf32, #tpu.memory_space<vmem>>, vector<1x128xf32>
    tpu.vector_store %arg3[%c0_30, %c0_31], %86 {strides = array<i32>} : memref<1x128xf32, #tpu.memory_space<vmem>>, vector<1x128xf32>,
    return
  }
  func.func @transform_0(%arg0: i32) -> (i32, i32) {
    %c0_i32 = arith.constant 0 : i32
    %c0_i32_0 = arith.constant 0 : i32
    return %c0_i32, %arg0 : i32, i32
  }
  func.func @transform_1(%arg0: i32) -> (i32, i32) {
    %c0_i32 = arith.constant 0 : i32
    %c0_i32_0 = arith.constant 0 : i32
    %c0_i32_1 = arith.constant 0 : i32
    return %c0_i32, %c0_i32_0 : i32, i32
  }
  func.func @transform_2(%arg0: i32) -> (i32, i32) {
    %c0_i32 = arith.constant 0 : i32
    %c0_i32_0 = arith.constant 0 : i32
    return %c0_i32, %arg0 : i32, i32
  }
}

</mosaic_0001>

<bundles_post_ra>
// kernel: tpu_custom_call.1
= control target key start
LH: loop header
LB: loop body
LE: loop exit
PB: predicated region body
PF: predicated region fallthrough
CT: control target
= control target key end

     0   :  { %7 = vsyncpa [#allocation3], 0  ;;  %s747_s0 = inlined_call_operand.hbm [shape: f32[3,128], index: 0, kind: input, shape index: {}]   ;;  %s748_s1 = inlined_call_operand.hbm [shape: f32[64,128], index: 1, kind: input, shape index: {}]   ;;  %s749_s2 = inlined_call_operand.hbm [shape: f32[1,128], index: 2, kind: output, shape index: {}]  }
   0x1   :  { %8 = vsyncpa [#allocation6], 0 }
   0x2   :  { %9 = vsyncpa [#allocation4], 0  ;;  %s652_s9 = smov [#allocation2]   ;;  %s653_s11 = smov [#allocation5]  }
   0x3   :  { %s16_s10 = sshll.u32 %s652_s9, 4  ;;  %s25_s12 = sshll.u32 %s653_s11, 4  ;;  %s17_s10 = int_to_ptr.vmem [resolvable:$true] %s16_s10  ;;  %s26_s12 = int_to_ptr.vmem [resolvable:$true] %s25_s12 }
   0x4   :  { %s594_s13 = scalar_lea.vmem %s17_s10, 64  ;;  %p599_p1 = scmp.lt.s32.totalorder %s17_s10, %s17_s10 }
   0x5   :  { %p595_p0 = scmp.ne.s32.totalorder %s17_s10, %s594_s13  ;;  %p600_p2 = scmp.lt.s32.totalorder %s594_s13, %s594_s13 }
   0x7   :  { %p601_p3 = por %p600_p2, %p599_p1 }
   0x9   :  { %p602_p4 = pnand %p601_p3, %p595_p0 }
   0xb   :  { %605 = shalt.err (!%p602_p4)
}
   0xc   :  { %19 = dma.hbm_to_vmem [thread:$0]  %s747_s0, 64, %s17_s10, [#allocation3]  }
   0xd   :  { %s614_s16 = scalar_lea.vmem %s26_s12, 1024  ;;  %p619_p6 = scmp.lt.s32.totalorder %s26_s12, %s26_s12 }
   0xe   :  { %p615_p5 = scmp.ne.s32.totalorder %s26_s12, %s614_s16  ;;  %p620_p7 = scmp.lt.s32.totalorder %s614_s16, %s614_s16 }
  0x10   :  { %p621_p8 = por %p620_p7, %p619_p6 }
  0x12   :  { %p622_p9 = pnand %p621_p8, %p615_p5 }
  0x14   :  { %625 = shalt.err (!%p622_p9)
}
  0x15   :  { %s654_s17 = smov 128   ;;  %s655_s18 = smov 8  }
  0x16   :  { %31 = dma.hbm_to_vmem [thread:$0]  %s748_s1, 1024, %s26_s12, [#allocation6], %s654_s17, %s654_s17, %s655_s18  }
  0x17   :  { %646 = dma.done.wait [#allocation3], 64  }
  0x18   :  { %647 = vsyncadd [#allocation3], 4294967232 }
  0x19   :  { %648 = dma.done.wait [#allocation6], 1024  }
  0x1a   :  { %649 = vsyncadd [#allocation6], 4294966272  ;;  %v656_v0 = vmov 0   ;;  %v41_v1 = vld [vmem:[#allocation5 + $0x30] sm:$0xff]  ;;  %v39_v2 = vld [vmem:[#allocation5 + $0x20] sm:$0xff]  ;;  %v657_v4 = vmov 2   ;;  %v63_v20 = vlaneseq }
  0x1b   :  { %550 = vset.pattern.permute.xlu1 %v656_v0  ;;  %549 = vset.pattern.permute.xlu0 %v656_v0  ;;  %v40_v3 = vld [vmem:[#allocation5 + $0x28] sm:$0xff]  ;;  %v42_v5 = vld [vmem:[#allocation5 + $0x38] sm:$0xff]  ;;  %v658_v6 = vmov 1   ;;  %v659_v7 = vmov 3   ;;  %v660_v8 = vmov 4   ;;  %v690_v9 = vld [vmem:[#allocation5] sm:$0xff] }
  0x1c   :  { %55 = vperm.xlu1 %550, %v41_v1   ;;  %45 = vperm.xlu0 %549, %v39_v2   ;;  %vm221_vm0 = vcmask 261120   ;;  %v692_v10 = vld [vmem:[#allocation5 + $0x10] sm:$0xff]  ;;  %v698_v11 = vld [vmem:[#allocation5 + $0x8] sm:$0xff]  ;;  %v661_v12 = vmov 32   ;;  %v662_v13 = vmov 37   ;;  %v704_v14 = vld [vmem:[#allocation5 + $0x18] sm:$0xff] }
  0x1d   :  { %518 = vmatprep.mubr.msk.f32.mxu0 %vm221_vm0, %v690_v9  ;;  %521 = vmatprep.mubr.msk.f32.mxu1 %vm221_vm0, %v692_v10  ;;  %v663_v15 = vmov 35   ;;  %v664_v16 = vmov 33   ;;  %v665_v19 = vmov 34   ;;  %v716_v23 = vshrl.u32 %v63_v20, 7  ;;  %v721_v27 = vld [vmem:[#allocation2] sm:$0x7] }
  0x1e   :  { %v666_v26 = vmov 36   ;;  %v667_v32 = vmov 38   ;;  %s668_s0 = smov [#allocation7]  }
  0x1f   :  { %v65_v25 = vsub.s32 0, %v716_v23  ;;  %v109_v31 = vsub.s32 1, %v716_v23  ;;  %s488_s1 = sshll.u32 %s668_s0, 4  ;;  %s489_s1 = int_to_ptr.vmem [resolvable:$true] %s488_s1 }
  0x20   :  { %551 = vset.pattern.permute.xlu1 %v657_v4  ;;  %50 = vperm.xlu0 %549, %v40_v3   ;;  %s626_s21 = scalar_lea.vmem %s489_s1, 16  ;;  %s630_s22 = scalar_lea.vmem %s489_s1, 32 }
  0x21   :  { %72 = vperm.xlu1 %551, %v39_v2   ;;  %v66_v30 = vrot.slane %v721_v27, %v65_v25  ;;  %v110_v35 = vrot.slane %v721_v27, %v109_v31  ;;  %p627_p10 = scmp.ne.s32.totalorder %s489_s1, %s626_s21  ;;  %p631_p11 = scmp.lt.s32.totalorder %s489_s1, %s489_s1 }
  0x22   :  { %p632_p12 = scmp.lt.s32.totalorder %s630_s22, %s626_s21 }
  0x24   :  { %60 = vperm.xlu0 %549, %v42_v5   ;;  %p633_p13 = por %p632_p12, %p631_p11 }
  0x25   :  { %552 = vset.pattern.permute.xlu1 %v658_v6 }
  0x26   :  { %92 = vperm.xlu1 %552, %v39_v2   ;;  %p634_p0 = pnand %p633_p13, %p627_p10 }
  0x28   :  { %553 = vset.pattern.permute.xlu0 %v657_v4 }
  0x29   :  { %76 = vperm.xlu0 %553, %v40_v3  }
  0x2a   :  { %96 = vperm.xlu1 %552, %v40_v3  }
  0x2d   :  { %84 = vperm.xlu0 %553, %v42_v5  }
  0x2e   :  { %554 = vset.pattern.permute.xlu1 %v657_v4 }
  0x2f   :  { %80 = vperm.xlu1 %554, %v41_v1  }
  0x31   :  { %557 = vset.pattern.permute.xlu0 %v659_v7 }
  0x32   :  { %162 = vperm.xlu0 %557, %v41_v1  }
  0x33   :  { %555 = vset.pattern.permute.xlu1 %v658_v6 }
  0x34   :  { %100 = vperm.xlu1 %555, %v41_v1  }
  0x36   :  { %560 = vset.pattern.permute.xlu0 %v660_v8 }
  0x37   :  { %182 = vperm.xlu0 %560, %v41_v1  }
  0x38   :  { %104 = vperm.xlu1 %555, %v42_v5  }
  0x3b   :  { %174 = vperm.xlu0 %560, %v39_v2  }
  0x3c   :  { %556 = vset.pattern.permute.xlu1 %v659_v7 }
  0x3d   :  { %166 = vperm.xlu1 %556, %v42_v5  }
  0x3f   :  { %563 = vset.pattern.permute.xlu0 %v661_v12 }
  0x40   :  { %208 = vperm.xlu0 %563, %v698_v11  }
  0x41   :  { %558 = vset.pattern.permute.xlu1 %v660_v8 }
  0x42   :  { %186 = vperm.xlu1 %558, %v42_v5  }
  0x44   :  { %564 = vset.pattern.permute.xlu0 %v662_v13 }
  0x45   :  { %390 = vperm.xlu0 %564, %v690_v9  }
  0x46   :  { %559 = vset.pattern.permute.xlu1 %v659_v7  ;;  %v474_v7 = vld [vmem:[#allocation5] sm:$0x1] }
  0x47   :  { %158 = vperm.xlu1 %559, %v40_v3  }
  0x49   :  { %569 = vset.pattern.permute.xlu0 %v663_v15 }
  0x4a   :  { %418 = vperm.xlu0 %569, %v698_v11  }
  0x4b   :  { %154 = vperm.xlu1 %559, %v39_v2  }
  0x4e   :  { %570 = vset.pattern.permute.xlu0 %v664_v16 }
  0x4f   :  { %561 = vset.pattern.permute.xlu1 %v660_v8  ;;  %354 = vperm.xlu0 %570, %v698_v11  }
  0x50   :  { %178 = vperm.xlu1 %561, %v40_v3  }
  0x53   :  { %362 = vperm.xlu0 %570, %v704_v14  }
  0x54   :  { %562 = vset.pattern.permute.xlu1 %v661_v12 }
  0x55   :  { %203 = vperm.xlu1 %562, %v690_v9  }
  0x57   :  { %575 = vset.pattern.permute.xlu0 %v665_v19 }
  0x58   :  { %374 = vperm.xlu0 %575, %v698_v11  }
  0x59   :  { %213 = vperm.xlu1 %562, %v692_v10  }
  0x5c   :  { %382 = vperm.xlu0 %575, %v704_v14  }
  0x5d   :  { %218 = vperm.xlu1 %562, %v704_v14  }
  0x60   :  { %579 = vset.pattern.permute.xlu0 %v666_v26 }
  0x61   :  { %565 = vset.pattern.permute.xlu1 %v662_v13  ;;  %454 = vperm.xlu0 %579, %v692_v10  }
  0x62   :  { %394 = vperm.xlu1 %565, %v698_v11  }
  0x65   :  { %581 = vset.pattern.permute.xlu0 %v667_v32 }
  0x66   :  { %566 = vset.pattern.permute.xlu1 %v664_v16 }
  0x67   :  { %350 = vperm.xlu1 %566, %v690_v9  }
  0x6b   :  { %567 = vset.pattern.permute.xlu1 %v662_v13 }
  0x6c   :  { %398 = vperm.xlu1 %567, %v692_v10  }
  0x70   :  { %568 = vset.pattern.permute.xlu1 %v663_v15 }
  0x71   :  { %414 = vperm.xlu1 %568, %v690_v9  }
  0x75   :  { %571 = vset.pattern.permute.xlu1 %v664_v16 }
  0x76   :  { %358 = vperm.xlu1 %571, %v692_v10  }
  0x7a   :  { %572 = vset.pattern.permute.xlu1 %v665_v19 }
  0x7b   :  { %370 = vperm.xlu1 %572, %v690_v9  }
  0x7f   :  { %573 = vset.pattern.permute.xlu1 %v662_v13 }
  0x80   :  { %402 = vperm.xlu1 %573, %v704_v14  }
  0x84   :  { %574 = vset.pattern.permute.xlu1 %v663_v15 }
  0x85   :  { %422 = vperm.xlu1 %574, %v692_v10  }
  0x89   :  { %576 = vset.pattern.permute.xlu1 %v665_v19 }
  0x8a   :  { %378 = vperm.xlu1 %576, %v692_v10  }
  0x8e   :  { %577 = vset.pattern.permute.xlu1 %v663_v15 }
  0x8f   :  { %426 = vperm.xlu1 %577, %v704_v14  }
  0x93   :  { %578 = vset.pattern.permute.xlu1 %v666_v26 }
  0x94   :  { %446 = vperm.xlu1 %578, %v690_v9  }
  0x97   :  { %v56_v17 = vpop.permute.xlu1 %55  ;;  %v46_v18 = vpop.permute.xlu0 %45 }
  0x98   :  { %v67_v37 = vmul.f32 %v66_v30, %v46_v18  ;;  %v69_v40 = vmul.f32 %v66_v30, %v56_v17  ;;  %450 = vperm.xlu1 %578, %v698_v11  }
  0x9b   :  { %v51_v22 = vpop.permute.xlu0 %50 }
  0x9c   :  { %v73_v21 = vpop.permute.xlu1 %72  ;;  %v68_v33 = vmul.f32 %v66_v30, %v51_v22  ;;  %458 = vperm.xlu1 %578, %v704_v14  }
  0x9d   :  { %v87_v43 = vadd.f32 %v73_v21, %v67_v37 }
  0x9f   :  { %v61_v28 = vpop.permute.xlu0 %60 }
  0xa0   :  { %v70_v48 = vmul.f32 %v66_v30, %v61_v28  ;;  %580 = vset.pattern.permute.xlu1 %v667_v32 }
  0xa1   :  { %v93_v24 = vpop.permute.xlu1 %92  ;;  %477 = vperm.xlu1 %580, %v474_v7  }
  0xa2   :  { %v111_v41 = vmul.f32 %v110_v35, %v93_v24 }
  0xa4   :  { %v77_v34 = vpop.permute.xlu0 %76  ;;  %v115_v49 = vadd.f32 %v111_v41, %v87_v43 }
  0xa5   :  { %v97_v29 = vpop.permute.xlu1 %96  ;;  %v88_v38 = vadd.f32 %v77_v34, %v68_v33 }
  0xa6   :  { %v112_v39 = vmul.f32 %v110_v35, %v97_v29 }
  0xa8   :  { %v116_v44 = vadd.f32 %v112_v39, %v88_v38  ;;  %v85_v47 = vpop.permute.xlu0 %84 }
  0xa9   :  { %v90_v53 = vadd.f32 %v85_v47, %v70_v48 }
  0xaa   :  { %v81_v36 = vpop.permute.xlu1 %80  ;;  %v119_v52 = vadd.f32 %v116_v44, %v115_v49 }
  0xab   :  { %v89_v45 = vadd.f32 %v81_v36, %v69_v40 }
  0xad   :  { %v163_v28 = vpop.permute.xlu0 %162 }
  0xaf   :  { %v101_v42 = vpop.permute.xlu1 %100 }
  0xb0   :  { %v113_v46 = vmul.f32 %v110_v35, %v101_v42 }
  0xb2   :  { %v117_v50 = vadd.f32 %v113_v46, %v89_v45  ;;  %v183_v31 = vpop.permute.xlu0 %182 }
  0xb3   :  { %v105_v51 = vpop.permute.xlu1 %104 }
  0xb4   :  { %v114_v54 = vmul.f32 %v110_v35, %v105_v51  ;;  %v120_v55 = vadd.f32 %v119_v52, %v117_v50 }
  0xb6   :  { %v118_v56 = vadd.f32 %v114_v54, %v90_v53  ;;  %v175_v43 = vpop.permute.xlu0 %174 }
  0xb8   :  { %v121_v57 = vadd.f32 %v120_v55, %v118_v56  ;;  %v167_v20 = vpop.permute.xlu1 %166 }
  0xba   :  { %v122_v58 = vrot.slane %v121_v57, 4 }
  0xbb   :  { %v209_v52 = vpop.permute.xlu0 %208 }
  0xbc   :  { %v123_v59 = vadd.f32 %v122_v58, %v121_v57 }
  0xbd   :  { %v187_v25 = vpop.permute.xlu1 %186 }
  0xbe   :  { %v124_v60 = vrot.slane %v123_v59, 2 }
  0xc0   :  { %v125_v61 = vadd.f32 %v124_v60, %v123_v59 }
  0xc2   :  { %v126_v62 = vrot.slane %v125_v61, 1  ;;  %v159_v26 = vpop.permute.xlu1 %158 }
  0xc4   :  { %v127_v63 = vadd.f32 %v126_v62, %v125_v61 }
  0xc6   :  { %v128_v0 = vmul.f32 0.03125, %v127_v63  ;;  %v155_v29 = vpop.permute.xlu1 %154 }
  0xc8   :  { %v129_v1 = vsub.f32 %v115_v49, %v128_v0  ;;  %v130_v2 = vsub.f32 %v116_v44, %v128_v0  ;;  %v131_v3 = vsub.f32 %v117_v50, %v128_v0  ;;  %v132_v4 = vsub.f32 %v118_v56, %v128_v0 }
  0xca   :  { %v133_v5 = vmul.f32 %v129_v1, %v129_v1  ;;  %v134_v6 = vmul.f32 %v130_v2, %v130_v2  ;;  %v135_v8 = vmul.f32 %v131_v3, %v131_v3  ;;  %v136_v12 = vmul.f32 %v132_v4, %v132_v4 }
  0xcb   :  { %v179_v39 = vpop.permute.xlu1 %178 }
  0xcc   :  { %v137_v10 = vadd.f32 %v134_v6, %v133_v5 }
  0xce   :  { %v138_v13 = vadd.f32 %v137_v10, %v135_v8 }
  0xd0   :  { %v139_v9 = vadd.f32 %v138_v13, %v136_v12  ;;  %v204_v50 = vpop.permute.xlu1 %203 }
  0xd2   :  { %v140_v15 = vrot.slane %v139_v9, 4 }
  0xd4   :  { %v141_v16 = vadd.f32 %v140_v15, %v139_v9  ;;  %v214_v51 = vpop.permute.xlu1 %213 }
  0xd6   :  { %v142_v17 = vrot.slane %v141_v16, 2 }
  0xd8   :  { %v143_v18 = vadd.f32 %v142_v17, %v141_v16  ;;  %v219_v59 = vpop.permute.xlu1 %218 }
  0xda   :  { %v144_v19 = vrot.slane %v143_v18, 1 }
  0xdc   :  { %v145_v21 = vadd.f32 %v144_v19, %v143_v18 }
  0xde   :  { %v146_v22 = vmul.f32 0.03125, %v145_v21 }
  0xe0   :  { %v147_v24 = vadd.f32 1e-05, %v146_v22 }
  0xe2   :  { %582 = vrsqrt.f32 %v147_v24 }
  0xef   :  { %v583_v30 = vpop.eup %582 }
  0xf0   :  { %v152_v32 = vmul.f32 %v583_v30, %v132_v4  ;;  %v150_v33 = vmul.f32 %v583_v30, %v130_v2  ;;  %v151_v34 = vmul.f32 %v583_v30, %v131_v3  ;;  %v149_v35 = vmul.f32 %v583_v30, %v129_v1  ;;  %v395_v1 = vpop.permute.xlu1 %394 }
  0xf2   :  { %v172_v36 = vmul.f32 %v167_v20, %v152_v32  ;;  %v170_v37 = vmul.f32 %v159_v26, %v150_v33  ;;  %v171_v38 = vmul.f32 %v163_v28, %v151_v34  ;;  %v169_v41 = vmul.f32 %v155_v29, %v149_v35  ;;  %v391_v28 = vpop.permute.xlu0 %390 }
  0xf4   :  { %v192_v40 = vadd.f32 %v187_v25, %v172_v36  ;;  %v191_v42 = vadd.f32 %v183_v31, %v171_v38  ;;  %v190_v45 = vadd.f32 %v179_v39, %v170_v37  ;;  %v189_v47 = vadd.f32 %v175_v43, %v169_v41 }
  0xf6   :  { %v196_v44 = vmax.f32 %v192_v40, 0.0  ;;  %v195_v46 = vmax.f32 %v191_v42, 0.0  ;;  %v194_v48 = vmax.f32 %v190_v45, 0.0  ;;  %v193_v49 = vmax.f32 %v189_v47, 0.0  ;;  %v419_v33 = vpop.permute.xlu0 %418 }
  0xf7   :  { %v407_v40 = vsub.s32 2, %v716_v23 }
  0xf8   :  { %510 = vmatprep.subr.mxu0 %v196_v44  ;;  %524 = vmatprep.subr.mxu1 %v196_v44 }
  0xf9   :  { %511 = vmatpush3.msra.mxu0 %v196_v44  ;;  %528 = vmatpush3.msra.mxu1 %v196_v44  ;;  %v408_v43 = vrot.slane %v721_v27, %v407_v40 }
  0xfa   :  { %512 = vmatprep.subr.mxu0 %v195_v46  ;;  %525 = vmatprep.subr.mxu1 %v195_v46  ;;  %v355_v37 = vpop.permute.xlu0 %354 }
  0xfb   :  { %513 = vmatpush3.msra.mxu0 %v195_v46  ;;  %529 = vmatpush3.msra.mxu1 %v195_v46  ;;  %v410_v44 = vmul.f32 %v408_v43, %v395_v1  ;;  %v409_v46 = vmul.f32 %v408_v43, %v391_v28 }
  0xfc   :  { %514 = vmatprep.subr.mxu0 %v194_v48  ;;  %526 = vmatprep.subr.mxu1 %v194_v48 }
  0xfd   :  { %515 = vmatpush3.msra.mxu0 %v194_v48  ;;  %530 = vmatpush3.msra.mxu1 %v194_v48 }
  0xfe   :  { %516 = vmatprep.subr.mxu0 %v193_v49  ;;  %527 = vmatprep.subr.mxu1 %v193_v49  ;;  %v363_v41 = vpop.permute.xlu0 %362 }
  0xff   :  { %517 = vmatpush3.msra.mxu0 %v193_v49  ;;  %531 = vmatpush3.msra.mxu1 %v193_v49 }
 0x100   :  { %519 = vmatmul.mubr.msk.f32.vlgmr.msra.gmra.mxu0 %vm221_vm0, %v698_v11  ;;  %522 = vmatmul.mubr.msk.f32.vlgmr.msra.gmra.mxu1 %vm221_vm0, %v704_v14  ;;  %v351_v14 = vpop.permute.xlu1 %350 }
 0x102   :  { %v375_v48 = vpop.permute.xlu0 %374 }
 0x104   :  { %v399_v7 = vpop.permute.xlu1 %398 }
 0x105   :  { %v411_v45 = vmul.f32 %v408_v43, %v399_v7 }
 0x108   :  { %v415_v17 = vpop.permute.xlu1 %414 }
 0x10c   :  { %v359_v24 = vpop.permute.xlu1 %358 }
 0x110   :  { %v371_v30 = vpop.permute.xlu1 %370 }
 0x114   :  { %v403_v35 = vpop.permute.xlu1 %402 }
 0x115   :  { %v412_v47 = vmul.f32 %v408_v43, %v403_v35 }
 0x118   :  { %v423_v39 = vpop.permute.xlu1 %422 }
 0x11c   :  { %v379_v42 = vpop.permute.xlu1 %378 }
 0x120   :  { %v427_v49 = vpop.permute.xlu1 %426 }
 0x124   :  { %v447_v23 = vpop.permute.xlu1 %446 }
 0x1c0   :  { %v520_v53 = vpop.f32.mrf.mxu0  ;;  %v523_v54 = vpop.f32.mrf.mxu1 }
 0x1c1   :  { %v302_v57 = vadd.f32 %v520_v53, %v209_v52  ;;  %v312_v62 = vadd.f32 %v523_v54, %v219_v59  ;;  %v430_v52 = vadd.f32 %v419_v33, %v410_v44  ;;  %v431_v53 = vadd.f32 %v423_v39, %v411_v45  ;;  %v383_v59 = vpop.permute.xlu0 %382 }
 0x1c2   :  { %v296_v55 = vpop.f32.mrf.mxu0  ;;  %v306_v56 = vpop.f32.mrf.mxu1  ;;  %v432_v54 = vadd.f32 %v427_v49, %v412_v47 }
 0x1c3   :  { %v297_v58 = vadd.f32 %v296_v55, %v204_v50  ;;  %v307_v61 = vadd.f32 %v306_v56, %v214_v51  ;;  %v429_v51 = vadd.f32 %v415_v17, %v409_v46  ;;  %v435_v1 = vmax.f32 %v431_v53, 0.0 }
 0x1c5   :  { %v315_v60 = vadd.f32 %v302_v57, %v297_v58 }
 0x1c7   :  { %v316_v63 = vadd.f32 %v315_v60, %v307_v61 }
 0x1c9   :  { %v317_v0 = vadd.f32 %v316_v63, %v312_v62  ;;  %v433_v63 = vmax.f32 %v429_v51, 0.0 }
 0x1cb   :  { %v318_v11 = vrot.slane %v317_v0, 4 }
 0x1cd   :  { %v319_v2 = vadd.f32 %v318_v11, %v317_v0  ;;  %v434_v0 = vmax.f32 %v430_v52, 0.0  ;;  %v436_v11 = vmax.f32 %v432_v54, 0.0 }
 0x1cf   :  { %v320_v3 = vrot.slane %v319_v2, 2 }
 0x1d1   :  { %v321_v4 = vadd.f32 %v320_v3, %v319_v2 }
 0x1d3   :  { %v322_v5 = vrot.slane %v321_v4, 1 }
 0x1d5   :  { %v323_v6 = vadd.f32 %v322_v5, %v321_v4 }
 0x1d7   :  { %v324_v8 = vmul.f32 0.03125, %v323_v6 }
 0x1d9   :  { %v327_v10 = vsub.f32 %v307_v61, %v324_v8  ;;  %v325_v12 = vsub.f32 %v297_v58, %v324_v8  ;;  %v326_v13 = vsub.f32 %v302_v57, %v324_v8  ;;  %v328_v9 = vsub.f32 %v312_v62, %v324_v8 }
 0x1db   :  { %v329_v15 = vmul.f32 %v325_v12, %v325_v12  ;;  %v330_v16 = vmul.f32 %v326_v13, %v326_v13  ;;  %v331_v18 = vmul.f32 %v327_v10, %v327_v10  ;;  %v332_v20 = vmul.f32 %v328_v9, %v328_v9 }
 0x1dd   :  { %v333_v19 = vadd.f32 %v330_v16, %v329_v15 }
 0x1df   :  { %v334_v21 = vadd.f32 %v333_v19, %v331_v18 }
 0x1e1   :  { %v335_v22 = vadd.f32 %v334_v21, %v332_v20 }
 0x1e3   :  { %v336_v25 = vrot.slane %v335_v22, 4 }
 0x1e5   :  { %v337_v26 = vadd.f32 %v336_v25, %v335_v22 }
 0x1e7   :  { %v338_v29 = vrot.slane %v337_v26, 2 }
 0x1e9   :  { %v339_v31 = vadd.f32 %v338_v29, %v337_v26 }
 0x1eb   :  { %v340_v32 = vrot.slane %v339_v31, 1 }
 0x1ed   :  { %v341_v34 = vadd.f32 %v340_v32, %v339_v31 }
 0x1ef   :  { %v342_v36 = vmul.f32 0.03125, %v341_v34 }
 0x1f1   :  { %v343_v38 = vadd.f32 1e-05, %v342_v36 }
 0x1f3   :  { %584 = vrsqrt.f32 %v343_v38 }
 0x200   :  { %v585_v50 = vpop.eup %584 }
 0x201   :  { %v345_v55 = vmul.f32 %v585_v50, %v325_v12  ;;  %v347_v56 = vmul.f32 %v585_v50, %v327_v10  ;;  %v346_v57 = vmul.f32 %v585_v50, %v326_v13  ;;  %v348_v58 = vmul.f32 %v585_v50, %v328_v9  ;;  %v451_v12 = vpop.permute.xlu1 %450 }
 0x203   :  { %v365_v60 = vmul.f32 %v351_v14, %v345_v55  ;;  %v367_v61 = vmul.f32 %v359_v24, %v347_v56  ;;  %v366_v27 = vmul.f32 %v355_v37, %v346_v57  ;;  %v368_v62 = vmul.f32 %v363_v41, %v348_v58  ;;  %v455_v14 = vpop.permute.xlu0 %454 }
 0x205   :  { %v385_v2 = vadd.f32 %v371_v30, %v365_v60  ;;  %v387_v3 = vadd.f32 %v379_v42, %v367_v61  ;;  %v386_v4 = vadd.f32 %v375_v48, %v366_v27  ;;  %v388_v5 = vadd.f32 %v383_v59, %v368_v62  ;;  %v459_v21 = vpop.permute.xlu1 %458 }
 0x207   :  { %v437_v6 = vadd.f32 %v433_v63, %v385_v2  ;;  %v439_v7 = vadd.f32 %v435_v1, %v387_v3  ;;  %v438_v8 = vadd.f32 %v434_v0, %v386_v4  ;;  %v440_v10 = vadd.f32 %v436_v11, %v388_v5 }
 0x209   :  { %v441_v13 = vmax.f32 %v437_v6, 0.0  ;;  %v442_v9 = vmax.f32 %v438_v8, 0.0  ;;  %v443_v15 = vmax.f32 %v439_v7, 0.0  ;;  %v444_v18 = vmax.f32 %v440_v10, 0.0  ;;  %v478_v32 = vpop.permute.xlu1 %477 }
 0x20b   :  { %v461_v16 = vmul.f32 %v447_v23, %v441_v13  ;;  %v462_v17 = vmul.f32 %v451_v12, %v442_v9  ;;  %v463_v20 = vmul.f32 %v455_v14, %v443_v15  ;;  %v464_v22 = vmul.f32 %v459_v21, %v444_v18 }
 0x20d   :  { %v465_v19 = vadd.f32 %v462_v17, %v461_v16 }
 0x20f   :  { %v466_v24 = vadd.f32 %v465_v19, %v463_v20 }
 0x211   :  { %v467_v25 = vadd.f32 %v466_v24, %v464_v22 }
 0x213   :  { %v468_v26 = vrot.slane %v467_v25, 4 }
 0x215   :  { %v469_v28 = vadd.f32 %v468_v26, %v467_v25 }
 0x217   :  { %v470_v29 = vrot.slane %v469_v28, 2 }
 0x219   :  { %v471_v30 = vadd.f32 %v470_v29, %v469_v28 }
 0x21b   :  { %v472_v31 = vrot.slane %v471_v30, 1 }
 0x21d   :  { %v473_v33 = vadd.f32 %v472_v31, %v471_v30 }
 0x21f   :  { %v480_v34 = vadd.f32 %v478_v32, %v473_v33 }
 0x221   :  { %481 = vst [vmem:[#allocation7] sm:$0x1] %v480_v34 }
 0x222   :  { %637 = shalt.err (!%p634_p0)
}
 0x223   :  { %491 = dma.vmem_to_hbm [thread:$0]  %s489_s1, 16, %s749_s2, [#allocation4]  }
 0x224   :  { %650 = dma.done.wait [#allocation4], 16  }
 0x225   :  { %651 = vsyncadd [#allocation4], 4294967280 }
 0x226   :  { %495 = vsyncpa [#allocation3], 1 }
 0x227   :  { %496 = vsyncpa [#allocation6], 1 }
 0x228   :  { %497 = vsyncpa [#allocation4], 1 }

</bundles_post_ra>
